<compile_context>
chip_gen: v7x
topology: tpu7x:2x2x1
jax: 0.10.0
libtpu: 0.0.40
codegen_flags: <defaults>
</compile_context>

<pallas_src>
import functools

import jax
import jax.numpy as jnp
from jax.experimental import pallas as pl
from jax.experimental.pallas import tpu as pltpu

# Module hyper-parameters (from the PyTorch source)
BLOCK_SIZE = 60
N_EMBED = 50
NUM_HEADS = 2
HEAD_SIZE = 25  # num_heads * head_size == n_embed (typical usage)

_NEG_INF = -1e30  # large finite negative: safe under masking, no NaN risk


def _round_up(x, m):
    return (x + m - 1) // m * m


def _pick_batch_block(B):
    """Largest block <= 8 that divides B while keeping >= 2 grid steps
    (so both v7x TensorCores get work); fall back to the whole batch."""
    for bb in (8, 4, 2, 1):
        if B % bb == 0 and B // bb >= 2:
            return bb
    return B


def _mha_kernel(x_ref, wqkv_ref, bqkv_ref, wp_ref, bp_ref, o_ref, *,
                num_heads, head_pad, scale):
    """One (Bb, Tp, Cp) batch block per grid step.

    x_ref    : (Bb, Tp, Cp)            zero-padded input block
    wqkv_ref : (Cp, 3*H*head_pad)      fused, pre-transposed QKV weights
    bqkv_ref : (1, 3*H*head_pad)       fused QKV bias
    wp_ref   : (H, head_pad, Cp)       pre-transposed output projection weight
    bp_ref   : (1, Cp)                 output projection bias
    o_ref    : (Bb, Tp, Cp)            output block
    """
    Bb, Tp, Cp = x_ref.shape
    n = Bb * Tp

    # (Bb, Tp, Cp) -> (Bb*Tp, Cp): leading-dim merge, layout no-op (Tp % 8 == 0).
    x2 = x_ref[...].reshape(n, Cp)

    # Single fused QKV projection for all heads (one MXU pass instead of six).
    qkv = jnp.dot(x2, wqkv_ref[...],
                  preferred_element_type=jnp.float32) + bqkv_ref[...]

    # Causal mask, built once and shared across heads / batch elements.
    # Zero-padded key positions sit at col >= T_real, so `col <= row` also
    # masks them out for every real query row.
    row = jax.lax.broadcasted_iota(jnp.int32, (Tp, Tp), 0)
    col = jax.lax.broadcasted_iota(jnp.int32, (Tp, Tp), 1)
    allowed = (col <= row)[None, :, :]            # (1, Tp, Tp)

    acc = None
    for h in range(num_heads):                    # static unroll, H is tiny
        def chunk(g):
            off = (g * num_heads + h) * head_pad  # 128-lane aligned slice
            return qkv[:, off:off + head_pad].reshape(Bb, Tp, head_pad)

        q, k, v = chunk(0), chunk(1), chunk(2)    # (Bb, Tp, head_pad)

        # Batched Q K^T: contraction on the last dim, no in-kernel transpose.
        s = jnp.einsum('bqd,bkd->bqk', q, k,
                       preferred_element_type=jnp.float32) * scale
        s = jnp.where(allowed, s, _NEG_INF)

        # Numerically stable softmax; reciprocal runs on the EUP slot.
        m = jnp.max(s, axis=-1, keepdims=True)
        e = jnp.exp(s - m)
        p = e * pl.reciprocal(jnp.sum(e, axis=-1, keepdims=True), approx=True)

        o = jnp.einsum('bqk,bkd->bqd', p, v,
                       preferred_element_type=jnp.float32)       # (Bb,Tp,hp)

        # Output projection accumulated per head (no concatenate needed).
        contrib = jnp.dot(o.reshape(n, head_pad), wp_ref[h],
                          preferred_element_type=jnp.float32)    # (n, Cp)
        acc = contrib if acc is None else acc + contrib

    out = acc + bp_ref[...]
    o_ref[...] = out.reshape(Bb, Tp, Cp).astype(o_ref.dtype)


def multi_head_attention(x, params, *, num_heads=NUM_HEADS, batch_block=None):
    """x: (B, T, C) float32.  Returns (B, T, C) float32 (eval-mode forward)."""
    B, T, C = x.shape
    wq, bq, wk, bk, wv, bv, wp, bp = params
    H, hs, _ = wq.shape
    assert H == num_heads
    scale = float(C) ** -0.5          # matches the PyTorch module: C ** (-0.5)

    # Lane/sublane-friendly padded sizes.
    Cp = _round_up(C, 128)
    hp = _round_up(hs, 128)
    Tp = _round_up(T, 8)
    Bb = _pick_batch_block(B) if batch_block is None else batch_block
    assert B % Bb == 0

    f32 = jnp.float32
    F = 3 * H * hp

    # Pack fused, pre-transposed, zero-padded weights (once, outside the kernel).
    wqkv = jnp.zeros((Cp, F), f32)
    bqkv = jnp.zeros((1, F), f32)
    for g, (w, b) in enumerate(((wq, bq), (wk, bk), (wv, bv))):
        for h in range(H):
            off = (g * H + h) * hp
            wqkv = wqkv.at[:C, off:off + hs].set(w[h].T.astype(f32))
            bqkv = bqkv.at[0, off:off + hs].set(b[h].astype(f32))

    wpT = jnp.swapaxes(wp, 0, 1).reshape(H, hs, C)        # (H, hs, C)
    wp_p = jnp.zeros((H, hp, Cp), f32).at[:, :hs, :C].set(wpT.astype(f32))
    bp_p = jnp.zeros((1, Cp), f32).at[0, :C].set(bp.reshape(-1).astype(f32))

    x_p = jnp.pad(x.astype(f32), ((0, 0), (0, Tp - T), (0, Cp - C)))

    kernel = functools.partial(_mha_kernel, num_heads=H, head_pad=hp,
                               scale=scale)

    def full(arr):
        nd = arr.ndim
        return pl.BlockSpec(arr.shape, lambda b, _nd=nd: (0,) * _nd)

    out_p = pl.pallas_call(
        kernel,
        out_shape=jax.ShapeDtypeStruct((B, Tp, Cp), f32),
        grid_spec=pltpu.PrefetchScalarGridSpec(
            num_scalar_prefetch=0,
            grid=(B // Bb,),
            in_specs=[
                pl.BlockSpec((Bb, Tp, Cp), lambda b: (b, 0, 0)),   # x
                full(wqkv), full(bqkv),                            # fused QKV
                full(wp_p), full(bp_p),                            # projection
            ],
            out_specs=pl.BlockSpec((Bb, Tp, Cp), lambda b: (b, 0, 0)),
        ),
        compiler_params=pltpu.CompilerParams(
            dimension_semantics=("parallel",)),
    )(x_p, wqkv, bqkv, wp_p, bp_p)

    return out_p[:, :T, :C]


def init_params(key, num_heads=NUM_HEADS, head_size=HEAD_SIZE, n_embed=N_EMBED):
    ks = jax.random.split(key, 8)
    s = 0.02
    wq = jax.random.normal(ks[0], (num_heads, head_size, n_embed), jnp.float32) * s
    bq = jax.random.normal(ks[1], (num_heads, head_size), jnp.float32) * s
    wk = jax.random.normal(ks[2], (num_heads, head_size, n_embed), jnp.float32) * s
    bk = jax.random.normal(ks[3], (num_heads, head_size), jnp.float32) * s
    wv = jax.random.normal(ks[4], (num_heads, head_size, n_embed), jnp.float32) * s
    bv = jax.random.normal(ks[5], (num_heads, head_size), jnp.float32) * s
    wp = jax.random.normal(ks[6], (n_embed, num_heads * head_size), jnp.float32) * s
    bp = jax.random.normal(ks[7], (1, n_embed), jnp.float32) * s
    return (wq, bq, wk, bk, wv, bv, wp, bp)


def reference(x, params):
    """Plain-JAX reference matching the PyTorch forward (eval mode)."""
    wq, bq, wk, bk, wv, bv, wp, bp = params
    B, T, C = x.shape
    scale = float(C) ** -0.5
    tril = jnp.tril(jnp.ones((T, T), jnp.float32))
    outs = []
    for h in range(wq.shape[0]):
        q = x @ wq[h].T + bq[h]
        k = x @ wk[h].T + bk[h]
        v = x @ wv[h].T + bv[h]
        wei = (q @ jnp.swapaxes(k, -2, -1)) * scale
        wei = jnp.where(tril == 0, -jnp.inf, wei)
        wei = jax.nn.softmax(wei, axis=-1)
        outs.append(wei @ v)
    cat = jnp.concatenate(outs, axis=-1)
    return cat @ wp.T + bp[0]


if __name__ == "__main__":
    key = jax.random.PRNGKey(0)
    k_x, k_p = jax.random.split(key)

    B, T = 2, 8  # T <= block_size (60)
    x = jax.random.normal(k_x, (B, T, N_EMBED), jnp.float32)
    params = init_params(k_p)

    out = multi_head_attention(x, params)
    out = jax.block_until_ready(out)

    ref = reference(x, params)
    assert out.shape == (B, T, N_EMBED)
    # approx reciprocal in the softmax costs ~1e-4 relative accuracy
    assert jnp.allclose(out, ref, atol=1e-3, rtol=1e-3), "mismatch vs reference"

    print("KERNEL_OK")
</pallas_src>

<mosaic_0001>
module attributes {stable_mosaic.version = 11 : i64} {
  func.func @_mha_kernel(%arg0: i32, %arg1: memref<1x8x128xf32, #tpu.memory_space<vmem>>, %arg2: memref<128x768xf32, #tpu.memory_space<vmem>>, %arg3: memref<1x768xf32, #tpu.memory_space<vmem>>, %arg4: memref<2x128x128xf32, #tpu.memory_space<vmem>>, %arg5: memref<1x128xf32, #tpu.memory_space<vmem>>, %arg6: memref<1x8x128xf32, #tpu.memory_space<vmem>>) attributes {dimension_semantics = [#tpu.dimension_semantics<parallel>], iteration_bounds = array<i64: 2>, scalar_prefetch = 0 : i64, scratch_operands = 0 : i64, tpu.core_type = #tpu.core_type<tc>, window_params = [{transform_indices = @transform_0, window_bounds = array<i64: 1, 8, 128>}, {pipeline_mode = #tpu.pipeline_mode<synchronous>, transform_indices = @transform_1, window_bounds = array<i64: 128, 768>}, {pipeline_mode = #tpu.pipeline_mode<synchronous>, transform_indices = @transform_2, window_bounds = array<i64: 1, 768>}, {pipeline_mode = #tpu.pipeline_mode<synchronous>, transform_indices = @transform_3, window_bounds = array<i64: 2, 128, 128>}, {pipeline_mode = #tpu.pipeline_mode<synchronous>, transform_indices = @transform_4, window_bounds = array<i64: 1, 128>}, {transform_indices = @transform_5, window_bounds = array<i64: 1, 8, 128>}]} {
    %c0 = arith.constant 0 : index
    %c0_0 = arith.constant 0 : index
    %c0_1 = arith.constant 0 : index
    %0 = vector.load %arg1[%c0, %c0_0, %c0_1] : memref<1x8x128xf32, #tpu.memory_space<vmem>>, vector<1x8x128xf32>
    %1 = vector.shape_cast %0 : vector<1x8x128xf32> to vector<8x128xf32>
    %c0_2 = arith.constant 0 : index
    %c0_3 = arith.constant 0 : index
    %2 = vector.load %arg2[%c0_2, %c0_3] : memref<128x768xf32, #tpu.memory_space<vmem>>, vector<128x768xf32>
    %cst = arith.constant dense<0.000000e+00> : vector<8x768xf32>
    %3 = tpu.matmul %1, %2, %cst {dimension_numbers = #tpu.dot_dimension_numbers<[1], [0], [0], [1], [0, 0, 1, 1], [], []>} : vector<8x128xf32>, vector<128x768xf32>, vector<8x768xf32> -> vector<8x768xf32>
    %c0_4 = arith.constant 0 : index
    %c0_5 = arith.constant 0 : index
    %4 = vector.load %arg3[%c0_4, %c0_5] : memref<1x768xf32, #tpu.memory_space<vmem>>, vector<1x768xf32>
    %5 = vector.broadcast %4 : vector<1x768xf32> to vector<8x768xf32>
    %6 = arith.addf %3, %5 : vector<8x768xf32>
    %7 = tpu.iota {dimensions = array<i32: 0>} : vector<8x8xi32>
    %8 = tpu.iota {dimensions = array<i32: 1>} : vector<8x8xi32>
    %9 = arith.cmpi sle, %8, %7 : vector<8x8xi32>
    %10 = vector.shape_cast %9 : vector<8x8xi1> to vector<1x8x8xi1>
    %11 = vector.extract_strided_slice %6 {offsets = [0, 0], sizes = [8, 128], strides = [1, 1]} : vector<8x768xf32> to vector<8x128xf32>
    %12 = vector.shape_cast %11 : vector<8x128xf32> to vector<1x8x128xf32>
    %13 = vector.extract_strided_slice %6 {offsets = [0, 256], sizes = [8, 128], strides = [1, 1]} : vector<8x768xf32> to vector<8x128xf32>
    %14 = vector.shape_cast %13 : vector<8x128xf32> to vector<1x8x128xf32>
    %15 = vector.extract_strided_slice %6 {offsets = [0, 512], sizes = [8, 128], strides = [1, 1]} : vector<8x768xf32> to vector<8x128xf32>
    %16 = vector.shape_cast %15 : vector<8x128xf32> to vector<1x8x128xf32>
    "tpu.trace_start"() <{level = 10 : i32, message = "bqd,bkd->bqk"}> : () -> ()
    %cst_6 = arith.constant dense<0.000000e+00> : vector<1x8x8xf32>
    %17 = tpu.matmul %12, %14, %cst_6 {dimension_numbers = #tpu.dot_dimension_numbers<[2], [2], [1], [1], [0, 0, 0, 1, 1, 1], [0], [0]>} : vector<1x8x128xf32>, vector<1x8x128xf32>, vector<1x8x8xf32> -> vector<1x8x8xf32>
    "tpu.trace_stop"() : () -> ()
    %cst_7 = arith.constant 0.141421363 : f32
    %18 = vector.broadcast %cst_7 : f32 to vector<1x8x8xf32>
    %19 = arith.mulf %17, %18 : vector<1x8x8xf32>
    %cst_8 = arith.constant -1.000000e+30 : f32
    %20 = vector.broadcast %cst_8 : f32 to vector<1x8x8xf32>
    %21 = arith.select %10, %19, %20 : vector<1x8x8xi1>, vector<1x8x8xf32>
    %cst_9 = arith.constant dense<0xFF800000> : vector<1x8xf32>
    %22 = vector.multi_reduction <maximumf>, %21, %cst_9 [2] : vector<1x8x8xf32> to vector<1x8xf32>
    %23 = vector.shape_cast %22 : vector<1x8xf32> to vector<1x8x1xf32>
    %24 = vector.broadcast %23 : vector<1x8x1xf32> to vector<1x8x8xf32>
    %25 = arith.subf %21, %24 : vector<1x8x8xf32>
    %26 = math.exp %25 : vector<1x8x8xf32>
    %cst_10 = arith.constant dense<0.000000e+00> : vector<1x8xf32>
    %27 = vector.multi_reduction <add>, %26, %cst_10 [2] : vector<1x8x8xf32> to vector<1x8xf32>
    %28 = vector.shape_cast %27 : vector<1x8xf32> to vector<1x8x1xf32>
    %29 = tpu.reciprocal %28 {approx = true} : vector<1x8x1xf32> -> vector<1x8x1xf32>
    %30 = vector.broadcast %29 : vector<1x8x1xf32> to vector<1x8x8xf32>
    %31 = arith.mulf %26, %30 : vector<1x8x8xf32>
    "tpu.trace_start"() <{level = 10 : i32, message = "bqk,bkd->bqd"}> : () -> ()
    %cst_11 = arith.constant dense<0.000000e+00> : vector<1x8x128xf32>
    %32 = tpu.matmul %31, %16, %cst_11 {dimension_numbers = #tpu.dot_dimension_numbers<[2], [1], [1], [2], [0, 0, 0, 1, 1, 2], [0], [0]>} : vector<1x8x8xf32>, vector<1x8x128xf32>, vector<1x8x128xf32> -> vector<1x8x128xf32>
    "tpu.trace_stop"() : () -> ()
    %33 = vector.shape_cast %32 : vector<1x8x128xf32> to vector<8x128xf32>
    %c0_12 = arith.constant 0 : index
    %c0_13 = arith.constant 0 : index
    %c0_14 = arith.constant 0 : index
    %34 = vector.load %arg4[%c0_12, %c0_13, %c0_14] : memref<2x128x128xf32, #tpu.memory_space<vmem>>, vector<1x128x128xf32>
    %35 = vector.shape_cast %34 : vector<1x128x128xf32> to vector<128x128xf32>
    %cst_15 = arith.constant dense<0.000000e+00> : vector<8x128xf32>
    %36 = tpu.matmul %33, %35, %cst_15 {dimension_numbers = #tpu.dot_dimension_numbers<[1], [0], [0], [1], [0, 0, 1, 1], [], []>} : vector<8x128xf32>, vector<128x128xf32>, vector<8x128xf32> -> vector<8x128xf32>
    %37 = vector.extract_strided_slice %6 {offsets = [0, 128], sizes = [8, 128], strides = [1, 1]} : vector<8x768xf32> to vector<8x128xf32>
    %38 = vector.shape_cast %37 : vector<8x128xf32> to vector<1x8x128xf32>
    %39 = vector.extract_strided_slice %6 {offsets = [0, 384], sizes = [8, 128], strides = [1, 1]} : vector<8x768xf32> to vector<8x128xf32>
    %40 = vector.shape_cast %39 : vector<8x128xf32> to vector<1x8x128xf32>
    %41 = vector.extract_strided_slice %6 {offsets = [0, 640], sizes = [8, 128], strides = [1, 1]} : vector<8x768xf32> to vector<8x128xf32>
    %42 = vector.shape_cast %41 : vector<8x128xf32> to vector<1x8x128xf32>
    "tpu.trace_start"() <{level = 10 : i32, message = "bqd,bkd->bqk"}> : () -> ()
    %cst_16 = arith.constant dense<0.000000e+00> : vector<1x8x8xf32>
    %43 = tpu.matmul %38, %40, %cst_16 {dimension_numbers = #tpu.dot_dimension_numbers<[2], [2], [1], [1], [0, 0, 0, 1, 1, 1], [0], [0]>} : vector<1x8x128xf32>, vector<1x8x128xf32>, vector<1x8x8xf32> -> vector<1x8x8xf32>
    "tpu.trace_stop"() : () -> ()
    %cst_17 = arith.constant 0.141421363 : f32
    %44 = vector.broadcast %cst_17 : f32 to vector<1x8x8xf32>
    %45 = arith.mulf %43, %44 : vector<1x8x8xf32>
    %cst_18 = arith.constant -1.000000e+30 : f32
    %46 = vector.broadcast %cst_18 : f32 to vector<1x8x8xf32>
    %47 = arith.select %10, %45, %46 : vector<1x8x8xi1>, vector<1x8x8xf32>
    %cst_19 = arith.constant dense<0xFF800000> : vector<1x8xf32>
    %48 = vector.multi_reduction <maximumf>, %47, %cst_19 [2] : vector<1x8x8xf32> to vector<1x8xf32>
    %49 = vector.shape_cast %48 : vector<1x8xf32> to vector<1x8x1xf32>
    %50 = vector.broadcast %49 : vector<1x8x1xf32> to vector<1x8x8xf32>
    %51 = arith.subf %47, %50 : vector<1x8x8xf32>
    %52 = math.exp %51 : vector<1x8x8xf32>
    %cst_20 = arith.constant dense<0.000000e+00> : vector<1x8xf32>
    %53 = vector.multi_reduction <add>, %52, %cst_20 [2] : vector<1x8x8xf32> to vector<1x8xf32>
    %54 = vector.shape_cast %53 : vector<1x8xf32> to vector<1x8x1xf32>
    %55 = tpu.reciprocal %54 {approx = true} : vector<1x8x1xf32> -> vector<1x8x1xf32>
    %56 = vector.broadcast %55 : vector<1x8x1xf32> to vector<1x8x8xf32>
    %57 = arith.mulf %52, %56 : vector<1x8x8xf32>
    "tpu.trace_start"() <{level = 10 : i32, message = "bqk,bkd->bqd"}> : () -> ()
    %cst_21 = arith.constant dense<0.000000e+00> : vector<1x8x128xf32>
    %58 = tpu.matmul %57, %42, %cst_21 {dimension_numbers = #tpu.dot_dimension_numbers<[2], [1], [1], [2], [0, 0, 0, 1, 1, 2], [0], [0]>} : vector<1x8x8xf32>, vector<1x8x128xf32>, vector<1x8x128xf32> -> vector<1x8x128xf32>
    "tpu.trace_stop"() : () -> ()
    %59 = vector.shape_cast %58 : vector<1x8x128xf32> to vector<8x128xf32>
    %c1 = arith.constant 1 : index
    %c0_22 = arith.constant 0 : index
    %c0_23 = arith.constant 0 : index
    %60 = vector.load %arg4[%c1, %c0_22, %c0_23] : memref<2x128x128xf32, #tpu.memory_space<vmem>>, vector<1x128x128xf32>
    %61 = vector.shape_cast %60 : vector<1x128x128xf32> to vector<128x128xf32>
    %cst_24 = arith.constant dense<0.000000e+00> : vector<8x128xf32>
    %62 = tpu.matmul %59, %61, %cst_24 {dimension_numbers = #tpu.dot_dimension_numbers<[1], [0], [0], [1], [0, 0, 1, 1], [], []>} : vector<8x128xf32>, vector<128x128xf32>, vector<8x128xf32> -> vector<8x128xf32>
    %63 = arith.addf %36, %62 : vector<8x128xf32>
    %c0_25 = arith.constant 0 : index
    %c0_26 = arith.constant 0 : index
    %64 = vector.load %arg5[%c0_25, %c0_26] : memref<1x128xf32, #tpu.memory_space<vmem>>, vector<1x128xf32>
    %65 = vector.broadcast %64 : vector<1x128xf32> to vector<8x128xf32>
    %66 = arith.addf %63, %65 : vector<8x128xf32>
    %67 = vector.shape_cast %66 : vector<8x128xf32> to vector<1x8x128xf32>
    %c0_27 = arith.constant 0 : index
    %c0_28 = arith.constant 0 : index
    %c0_29 = arith.constant 0 : index
    %68 = vector.load %arg6[%c0_27, %c0_28, %c0_29] : memref<1x8x128xf32, #tpu.memory_space<vmem>>, vector<1x8x128xf32>
    tpu.vector_store %arg6[%c0_27, %c0_28, %c0_29], %67 {strides = array<i32>} : memref<1x8x128xf32, #tpu.memory_space<vmem>>, vector<1x8x128xf32>,
    return
  }
  func.func @transform_0(%arg0: i32) -> (i32, i32, i32) {
    %c0_i32 = arith.constant 0 : i32
    %c0_i32_0 = arith.constant 0 : i32
    %c0_i32_1 = arith.constant 0 : i32
    return %arg0, %c0_i32, %c0_i32_0 : i32, i32, i32
  }
  func.func @transform_1(%arg0: i32) -> (i32, i32) {
    %c0_i32 = arith.constant 0 : i32
    %c0_i32_0 = arith.constant 0 : i32
    %c0_i32_1 = arith.constant 0 : i32
    return %c0_i32, %c0_i32_0 : i32, i32
  }
  func.func @transform_2(%arg0: i32) -> (i32, i32) {
    %c0_i32 = arith.constant 0 : i32
    %c0_i32_0 = arith.constant 0 : i32
    %c0_i32_1 = arith.constant 0 : i32
    return %c0_i32, %c0_i32_0 : i32, i32
  }
  func.func @transform_3(%arg0: i32) -> (i32, i32, i32) {
    %c0_i32 = arith.constant 0 : i32
    %c0_i32_0 = arith.constant 0 : i32
    %c0_i32_1 = arith.constant 0 : i32
    %c0_i32_2 = arith.constant 0 : i32
    return %c0_i32, %c0_i32_0, %c0_i32_1 : i32, i32, i32
  }
  func.func @transform_4(%arg0: i32) -> (i32, i32) {
    %c0_i32 = arith.constant 0 : i32
    %c0_i32_0 = arith.constant 0 : i32
    %c0_i32_1 = arith.constant 0 : i32
    return %c0_i32, %c0_i32_0 : i32, i32
  }
  func.func @transform_5(%arg0: i32) -> (i32, i32, i32) {
    %c0_i32 = arith.constant 0 : i32
    %c0_i32_0 = arith.constant 0 : i32
    %c0_i32_1 = arith.constant 0 : i32
    return %arg0, %c0_i32, %c0_i32_0 : i32, i32, i32
  }
}

</mosaic_0001>

<bundles_post_ra>
// kernel: tpu_custom_call.1
= control target key start
LH: loop header
LB: loop body
LE: loop exit
PB: predicated region body
PF: predicated region fallthrough
CT: control target
= control target key end

     0   :  { %10 = vsyncpa [#allocation3], 0  ;;  %s2112_s0 = inlined_call_operand.hbm [shape: f32[2,8,128], index: 0, kind: input, shape index: {}]   ;;  %s2113_s1 = inlined_call_operand.hbm [shape: f32[128,768], index: 1, kind: input, shape index: {}]   ;;  %s2114_s2 = inlined_call_operand.vmem [shape: f32[1,768], index: 2, kind: input, shape index: {}]   ;;  %s2115_s3 = inlined_call_operand.hbm [shape: f32[2,128,128], index: 3, kind: input, shape index: {}]   ;;  %s2116_s4 = inlined_call_operand.vmem [shape: f32[1,128], index: 4, kind: input, shape index: {}]   ;;  %s2117_s5 = inlined_call_operand.hbm [shape: f32[2,8,128], index: 5, kind: output, shape index: {}]  }
   0x1   :  { %12 = vsyncpa [#allocation3 + $0x1], 0 }
   0x2   :  { %13 = vsyncpa [#allocation6], 0 }
   0x3   :  { %14 = vsyncpa [#allocation4], 0 }
   0x4   :  { %16 = vsyncpa [#allocation4 + $0x1], 0  ;;  %s1790_s18 = smov 0   ;;  %s1792_s19 = smov 0  }
   0x5   :  { %s1794_s20 = smov 0   ;;  %s1796_s21 = smov 0  }
   0x6 LB: > { %s1811_s22 = sadd.s32 4294967295, %s1747_s21   ;;  %s1214_s23 = sadd.s32 4294967294, %s1747_s21   ;;  %s1747_s21 = sphi %s1796_s21, %s2137_s21   ;;  %s1743_s20 = sphi %s1794_s20, %s2136_s20   ;;  %s1739_s19 = sphi %s1792_s19, %s2135_s19   ;;  %s1735_s18 = sphi %s1790_s18, %s2134_s18  }
   0x7   : > { %p42_p0 = scmp.ne.s32.totalorder %s1739_s19, %s1735_s18  ;;  %p2118_p1 = scmp.eq.s32.totalorder %s1811_s22, 0 }
   0x8   : > { %p156_p3 = scmp.eq.s32.totalorder %s1214_s23, 1  ;;  %p1215_p5 = scmp.ge.s32.totalorder %s1747_s21, 1 }
   0x9   : > { %p1820_p4 = por %p2118_p1, %p42_p0  ;;  %p163_p7 = scmp.lt.s32.totalorder %s1747_s21, 3 }
   0xa   : > { %p1825_p6 = por %p156_p3, %p42_p0  ;;  %s1749_s27 = smov [#allocation5]  }
   0xb   : > { %s2121_s24 = scalar_select %p1820_p4, 1, 0 }
   0xc   : > { %s2122_s25 = scalar_select %p1825_p6, 1, 0 }
   0xd   : > { %p1830_p8 = pnand %p1215_p5, %p163_p7  ;;  %s175_s28 = sshll.u32 %s1749_s27, 4  ;;  %s1834_s28 = int_to_ptr.vmem [resolvable:$true] %s175_s28 }
   0xe   : > { %s1750_s30 = smov [#allocation7]   ;;  %s1591_s9 = scalar_lea.hbm %s2113_s1, 12288 }
   0xf   : > { %p1521_p9 = pneg %p1830_p8  ;;  %s191_s6 = sshll.u32 %s1750_s30, 4  ;;  %s1845_s6 = int_to_ptr.vmem [resolvable:$true] %s191_s6 }
  0x10   : > { %p1592_p12 = scmp.ne.s32.totalorder %s2113_s1, %s1591_s9  ;;  %p1598_p5 = scmp.lt.u32.totalorder %s1591_s9, %s2113_s1 }
  0x11   : > { %p1841_p11 = pnand %p1521_p9, %p2118_p1 }
  0x13   : > { %p1593_p13 = pneg %p1841_p11 }
  0x15   : > { %p1594_p0 = pnand %p1593_p13, %p1592_p12 }
  0x17   : > { %p1595_p3 = pneg %p1594_p0 }
  0x19   : > { %p1600_p7 = pnand %p1598_p5, %p1595_p3 }
  0x1b   : > { %1603 = shalt.err (!%p1600_p7)
}
  0x1c   : > { %s1604_s14 = scalar_lea.vmem %s1834_s28, 12288  ;;  %p1612_p2 = scmp.lt.s32.totalorder %s1834_s28, %s1834_s28 }
  0x1d   : > { %p1605_p9 = scmp.ne.s32.totalorder %s1834_s28, %s1604_s14  ;;  %p1613_p12 = scmp.lt.s32.totalorder %s1604_s14, %s1604_s14 }
  0x1f   : > { %p1607_p10 = pnand %p1605_p9, %p1593_p13  ;;  %p1614_p0 = por %p1613_p12, %p1612_p2 }
  0x21   : > { %p1608_p1 = pneg %p1607_p10 }
  0x23   : > { %p1615_p6 = pnand %p1614_p0, %p1608_p1 }
  0x25   : > { %1618 = shalt.err (!%p1615_p6)
}
  0x26   : > { %s1751_s15 = smov 768   ;;  %s1752_s16 = smov 48  }
  0x27   : > { %1524 = dma.hbm_to_vmem [thread:$0]  (!%p1841_p11), %s2113_s1, 12288, %s1834_s28, [#allocation6], %s1751_s15, %s1751_s15, %s1752_s16  }
  0x28   : > { %s1619_s7 = scalar_lea.hbm %s2115_s3, 4096 }
  0x29   : > { %p1620_p2 = scmp.ne.s32.totalorder %s2115_s3, %s1619_s7  ;;  %p1626_p10 = scmp.lt.u32.totalorder %s1619_s7, %s2115_s3 }
  0x2b   : > { %p1622_p1 = pnand %p1620_p2, %p1593_p13 }
  0x2d   : > { %p1623_p6 = pneg %p1622_p1 }
  0x2f   : > { %p1628_p3 = pnand %p1626_p10, %p1623_p6 }
  0x31   : > { %1631 = shalt.err (!%p1628_p3)
}
  0x32   : > { %s1632_s28 = scalar_lea.vmem %s1845_s6, 4096  ;;  %p1640_p12 = scmp.lt.s32.totalorder %s1845_s6, %s1845_s6 }
  0x33   : > { %p1633_p5 = scmp.ne.s32.totalorder %s1845_s6, %s1632_s28  ;;  %p1641_p0 = scmp.lt.s32.totalorder %s1632_s28, %s1632_s28 }
  0x35   : > { %p1635_p7 = pnand %p1633_p5, %p1593_p13  ;;  %p1642_p2 = por %p1641_p0, %p1640_p12 }
  0x37   : > { %p1636_p9 = pneg %p1635_p7 }
  0x39   : > { %p1643_p1 = pnand %p1642_p2, %p1636_p9 }
  0x3b   : > { %1646 = shalt.err (!%p1643_p1)
}
  0x3c   : > { %s1753_s12 = smov 128   ;;  %s1754_s13 = smov 8  }
  0x3d   : > { %1527 = dma.hbm_to_vmem [thread:$0]  (!%p1841_p11), %s2115_s3, 4096, %s1845_s6, [#allocation6], %s1753_s12, %s1753_s12, %s1754_s13  }
  0x3e   : > { %s1900_s16 = sadd.s32 1, %s1747_s21   ;;  %s29_s23 = sadd.s32 1, %s1743_s20 }
  0x3f   : > { %s26_s17 = ssub.s32 %s1747_s21, %s1900_s16  ;;  %p36_p6 = scmp.ne.s32.totalorder %s1743_s20, %s1739_s19 }
  0x40   : > { %p27_p13 = scmp.eq.s32.totalorder %s26_s17, 0  ;;  %p37_p10 = scmp.eq.s32.totalorder %s1747_s21, 0 }
  0x41   : > { %p2125_p5 = scmp.eq.s32.totalorder %s1811_s22, 1  ;;  %p1538_p9 = scmp.lt.s32.totalorder %s1747_s21, 2 }
  0x42   : > { %s1909_s27 = scalar_select %p27_p13, %s1743_s20, %s29_s23  }
  0x43   : > { %p38_p3 = por %p37_p10, %p36_p6  ;;  %p1913_p7 = por %p2125_p5, %p36_p6 }
  0x44   : > { %s208_s29 = sand.u32 1, %s1743_s20   ;;  %s1220_s6 = sshll.u32 %s1747_s21, 7 }
  0x45   : > { %s2126_s30 = scalar_select %p1913_p7, 1, 0 }
  0x46   : > { %s1219_s7 = sshll.u32 %s208_s29, 3  ;;  %s1923_s10 = scalar_lea.hbm %s2112_s0, %s1220_s6 }
  0x47   : > { %s212_s11 = scalar_lea.vmem [#allocation2], %s1219_s7  ;;  %p1927_p11 = pnand %p1538_p9, %p38_p3 }
  0x48   : > { %s219_s28 = sshll.u32 %s212_s11, 4  ;;  %s209_s13 = scalar_lea.sflag [#allocation3], %s208_s29  ;;  %s1925_s28 = int_to_ptr.vmem [resolvable:$true] %s219_s28 }
  0x49   : > { %s1647_s14 = scalar_lea.hbm %s1923_s10, 128  ;;  %p1649_p0 = pneg %p1927_p11 }
  0x4a   : > { %p1648_p12 = scmp.ne.s32.totalorder %s1923_s10, %s1647_s14  ;;  %s1652_s23 = scalar_lea.hbm %s2112_s0, 256 }
  0x4b   : > { %p1653_p13 = scmp.lt.u32.totalorder %s1923_s10, %s2112_s0  ;;  %p1654_p6 = scmp.lt.u32.totalorder %s1652_s23, %s1647_s14 }
  0x4c   : > { %p1650_p2 = pnand %p1649_p0, %p1648_p12  ;;  %p1656_p3 = scmp.lt.u32.totalorder %s1647_s14, %s1923_s10 }
  0x4d   : > { %p1655_p10 = por %p1654_p6, %p1653_p13 }
  0x4e   : > { %p1651_p1 = pneg %p1650_p2 }
  0x4f   : > { %p1657_p5 = por %p1656_p3, %p1655_p10 }
  0x51   : > { %p1658_p9 = pnand %p1657_p5, %p1651_p1 }
  0x53   : > { %1661 = shalt.err (!%p1658_p9)
}
  0x54   : > { %s1662_s29 = scalar_lea.vmem %s1925_s28, 128  ;;  %s1755_s8 = smov [#allocation2]  }
  0x55   : > { %p1663_p12 = scmp.ne.s32.totalorder %s1925_s28, %s1662_s29  ;;  %s1667_s9 = sshll.u32 %s1755_s8, 4  ;;  %s1668_s9 = int_to_ptr.vmem [resolvable:$false] %s1667_s9 }
  0x56   : > { %s1669_s11 = scalar_lea.vmem %s1668_s9, 256  ;;  %p1670_p4 = scmp.lt.s32.totalorder %s1925_s28, %s1668_s9 }
  0x57   : > { %p1665_p2 = pnand %p1663_p12, %p1649_p0  ;;  %p1671_p13 = scmp.lt.s32.totalorder %s1669_s11, %s1662_s29 }
  0x59   : > { %p1666_p7 = pneg %p1665_p2  ;;  %p1672_p6 = por %p1671_p13, %p1670_p4 }
  0x5b   : > { %p1673_p10 = pnand %p1672_p6, %p1666_p7 }
  0x5d   : > { %1676 = shalt.err (!%p1673_p10)
}
  0x5e   : > { %1531 = dma.hbm_to_vmem [thread:$0]  (!%p1927_p11), %s1923_s10, 128, %s1925_s28, %s209_s13  }
  0x5f   : > { %228 = sbr.rel (%p1830_p8) target bundleno = 1862 (0x746), region = 40  ;;  %s1959_s14 = sand.u32 (!%p1830_p8), 1, %s1739_s19  }
  0x60   : > { %s1222_s15 = sshll.u32 (!%p1830_p8), %s1959_s14, 3  ;;  %s231_s17 = scalar_lea.sflag (!%p1830_p8), [#allocation3], %s1959_s14 }
  0x61   : > { %s1965_s23 = scalar_lea.vmem (!%p1830_p8), [#allocation2], %s1222_s15  ;;  %p2128_p4 = scmp.ne.s32.totalorder (!%p1830_p8), %s2121_s24, 0 }
  0x66   : > { %1722 = dma.done.wait (%p2128_p4), %s231_s17, 128  }
  0x67   : > { %1724 = vsyncadd (%p2128_p4), %s231_s17, 4294967168  ;;  %p2129_p7 = scmp.eq.s32.totalorder %s1811_s22, 0 }
  0x69   : > { %1726 = dma.done.wait (%p2129_p7), [#allocation6], 16384   ;;  %p2130_p8 = pmov %p2129_p7 }
  0x6a   : > { %v1756_v0 = vmov 0.0   ;;  %v273_v1 = vld [vmem:[#allocation5 + $0x18] sm:$0xff]  ;;  %v279_v2 = vld [vmem:[#allocation5 + $0x48] sm:$0xff]  ;;  %v272_v3 = vld [vmem:[#allocation5 + $0x10] sm:$0xff]  ;;  %vm1757_vm0 = vmmov 0   ;;  %vm688_vm2 = vcmask 64512  }
  0x6b   : > { %1728 = vsyncadd (%p2130_p8), [#allocation6], 4294950912  ;;  %533 = vmatprep.mubr.f32.mxu1 %v1756_v0  ;;  %462 = vmatprep.mubr.f32.mxu0 %v1756_v0  ;;  %v1397_v4 = vpack.c.bf16 %v279_v2, %v273_v1  ;;  %v278_v5 = vld [vmem:[#allocation5 + $0x40] sm:$0xff]  ;;  %v271_v6 = vld [vmem:[#allocation5 + $0x8] sm:$0xff]  ;;  %s1230_s12 = sshll.u32 %s1811_s22, 7  ;;  %s268_s13 = scalar_lea.vmem [#allocation8], %s1222_s15 }
  0x6c   : > { %v277_v7 = vld [vmem:[#allocation5 + $0x38] sm:$0xff]  ;;  %v1399_v8 = vpack.c.bf16 %v278_v5, %v272_v3  ;;  %v270_v10 = vld [vmem:[#allocation5] sm:$0xff]  ;;  %v276_v11 = vld [vmem:[#allocation5 + $0x30] sm:$0xff]  ;;  %s1125_s7 = sshll.u32 %s268_s13, 4  ;;  %s2068_s8 = scalar_lea.hbm %s2117_s5, %s1230_s12  ;;  %s2070_s7 = int_to_ptr.vmem [resolvable:$true] %s1125_s7 }
  0x6d   : > { %v1365_v9 = vpack.c.bf16 %v277_v7, %v271_v6  ;;  %v285_v12 = vld [vmem:[#allocation5 + $0x78] sm:$0xff]  ;;  %1398 = vmatprep.subr.bf16.mxu1 %v1397_v4  ;;  %v1367_v13 = vpack.c.bf16 %v276_v11, %v270_v10  ;;  %v291_v14 = vld [vmem:[#allocation5 + $0xa8] sm:$0xff]  ;;  %v284_v15 = vld [vmem:[#allocation5 + $0x70] sm:$0xff]  ;;  %s1112_s9 = scalar_lea.sflag [#allocation4], %s1959_s14  ;;  %s1677_s11 = scalar_lea.vmem %s2070_s7, 128 }
  0x6e   : > { %v290_v16 = vld [vmem:[#allocation5 + $0xa0] sm:$0xff]  ;;  %1400 = vmatpush1.bf16.msra.mxu1 %v1399_v8  ;;  %v1401_v17 = vpack.c.bf16 %v291_v14, %v285_v12  ;;  %v283_v19 = vld [vmem:[#allocation5 + $0x68] sm:$0xff]  ;;  %v289_v20 = vld [vmem:[#allocation5 + $0x98] sm:$0xff]  ;;  %p1678_p11 = scmp.ne.s32.totalorder %s2070_s7, %s1677_s11  ;;  %p2131_p0 = scmp.ne.s32.totalorder %s2126_s30, 0 }
  0x6f   : > { %1366 = vmatprep.subr.bf16.mxu0 %v1365_v9  ;;  %v1403_v18 = vpack.c.bf16 %v290_v16, %v284_v15  ;;  %v282_v21 = vld [vmem:[#allocation5 + $0x60] sm:$0xff]  ;;  %v1369_v22 = vpack.c.bf16 %v289_v20, %v283_v19  ;;  %v288_v23 = vld [vmem:[#allocation5 + $0x90] sm:$0xff]  ;;  %v297_v24 = vld [vmem:[#allocation5 + $0xd8] sm:$0xff]  ;;  %s1759_s22 = smov [#allocation8]  }
  0x70   : > { %1368 = vmatpush1.bf16.msra.mxu0 %v1367_v13  ;;  %v303_v25 = vld [vmem:[#allocation5 + $0x108] sm:$0xff]  ;;  %1402 = vmatprep.subr.bf16.mxu1 %v1401_v17  ;;  %v1371_v26 = vpack.c.bf16 %v288_v23, %v282_v21  ;;  %v296_v28 = vld [vmem:[#allocation5 + $0xd0] sm:$0xff]  ;;  %v302_v29 = vld [vmem:[#allocation5 + $0x100] sm:$0xff]  ;;  %p1679_p1 = pnand %p1678_p11, %p2131_p0  ;;  %s1681_s15 = sshll.u32 %s1759_s22, 4  ;;  %s1682_s15 = int_to_ptr.vmem [resolvable:$false] %s1681_s15 }
  0x71   : > { %v1405_v27 = vpack.c.bf16 %v303_v25, %v297_v24  ;;  %v295_v30 = vld [vmem:[#allocation5 + $0xc8] sm:$0xff]  ;;  %1370 = vmatprep.subr.bf16.mxu0 %v1369_v22  ;;  %v301_v31 = vld [vmem:[#allocation5 + $0xf8] sm:$0xff]  ;;  %v294_v32 = vld [vmem:[#allocation5 + $0xc0] sm:$0xff]  ;;  %v1407_v34 = vpack.c.bf16 %v302_v29, %v296_v28  ;;  %s1683_s17 = scalar_lea.vmem %s1682_s15, 256  ;;  %p1684_p5 = scmp.lt.s32.totalorder %s2070_s7, %s1682_s15 }
  0x72   : > { %v300_v33 = vld [vmem:[#allocation5 + $0xf0] sm:$0xff]  ;;  %1404 = vmatpush1.bf16.msra.mxu1 %v1403_v18  ;;  %v1373_v35 = vpack.c.bf16 %v301_v31, %v295_v30  ;;  %v309_v36 = vld [vmem:[#allocation5 + $0x138] sm:$0xff]  ;;  %v315_v37 = vld [vmem:[#allocation5 + $0x168] sm:$0xff]  ;;  %p1680_p3 = pneg %p1679_p1  ;;  %p1685_p9 = scmp.lt.s32.totalorder %s1683_s17, %s1677_s11 }
  0x73   : > { %v308_v38 = vld [vmem:[#allocation5 + $0x130] sm:$0xff]  ;;  %1406 = vmatprep.subr.bf16.mxu1 %v1405_v27  ;;  %v1375_v39 = vpack.c.bf16 %v300_v33, %v294_v32  ;;  %v1409_v40 = vpack.c.bf16 %v315_v37, %v309_v36  ;;  %v314_v41 = vld [vmem:[#allocation5 + $0x160] sm:$0xff]  ;;  %v307_v42 = vld [vmem:[#allocation5 + $0x128] sm:$0xff] }
  0x74   : > { %1372 = vmatpush1.bf16.msra.mxu0 %v1371_v26  ;;  %v313_v43 = vld [vmem:[#allocation5 + $0x158] sm:$0xff]  ;;  %v306_v45 = vld [vmem:[#allocation5 + $0x120] sm:$0xff]  ;;  %v312_v46 = vld [vmem:[#allocation5 + $0x150] sm:$0xff]  ;;  %v1411_v49 = vpack.c.bf16 %v314_v41, %v308_v38  ;;  %p1686_p12 = por %p1685_p9, %p1684_p5 }
  0x75   : > { %1374 = vmatprep.subr.bf16.mxu0 %v1373_v35  ;;  %v1377_v44 = vpack.c.bf16 %v313_v43, %v307_v42  ;;  %v321_v47 = vld [vmem:[#allocation5 + $0x198] sm:$0xff]  ;;  %v327_v48 = vld [vmem:[#allocation5 + $0x1c8] sm:$0xff]  ;;  %v1379_v52 = vpack.c.bf16 %v312_v46, %v306_v45  ;;  %v320_v54 = vld [vmem:[#allocation5 + $0x190] sm:$0xff]  ;;  %v368_v35 = vlaneseq }
  0x76   : > { %1408 = vmatpush1.bf16.msra.mxu1 %v1407_v34  ;;  %v319_v50 = vld [vmem:[#allocation5 + $0x188] sm:$0xff]  ;;  %v325_v51 = vld [vmem:[#allocation5 + $0x1b8] sm:$0xff]  ;;  %v1413_v53 = vpack.c.bf16 %v327_v48, %v321_v47  ;;  %v326_v55 = vld [vmem:[#allocation5 + $0x1c0] sm:$0xff]  ;;  %p1687_p2 = pnand %p1686_p12, %p1680_p3 }
  0x77   : > { %1410 = vmatprep.subr.bf16.mxu1 %v1409_v40  ;;  %v318_v56 = vld [vmem:[#allocation5 + $0x180] sm:$0xff]  ;;  %v1381_v57 = vpack.c.bf16 %v325_v51, %v319_v50  ;;  %v324_v58 = vld [vmem:[#allocation5 + $0x1b0] sm:$0xff]  ;;  %v333_v59 = vld [vmem:[#allocation5 + $0x1f8] sm:$0xff]  ;;  %v1415_v63 = vpack.c.bf16 %v326_v55, %v320_v54  ;;  %v1987_v36 = vshrl.u32 %v368_v35, 7 }
  0x78   : > { %1376 = vmatpush1.bf16.msra.mxu0 %v1375_v39  ;;  %v339_v60 = vld [vmem:[#allocation5 + $0x228] sm:$0xff]  ;;  %v337_v62 = vld [vmem:[#allocation5 + $0x218] sm:$0xff]  ;;  %v1383_v1 = vpack.c.bf16 %v324_v58, %v318_v56  ;;  %v332_v3 = vld [vmem:[#allocation5 + $0x1f0] sm:$0xff] }
  0x79   : > { %1378 = vmatprep.subr.bf16.mxu0 %v1377_v44  ;;  %v331_v61 = vld [vmem:[#allocation5 + $0x1e8] sm:$0xff]  ;;  %v1417_v2 = vpack.c.bf16 %v339_v60, %v333_v59  ;;  %v338_v4 = vld [vmem:[#allocation5 + $0x220] sm:$0xff]  ;;  %v336_v7 = vld [vmem:[#allocation5 + $0x210] sm:$0xff]  ;;  %v378_v37 = vsub.s32 2, %v1987_v36  ;;  %v370_v39 = vsub.s32 0, %v1987_v36 }
  0x7a   : > { %1412 = vmatpush1.bf16.msra.mxu1 %v1411_v49  ;;  %v330_v5 = vld [vmem:[#allocation5 + $0x1e0] sm:$0xff]  ;;  %v1385_v6 = vpack.c.bf16 %v337_v62, %v331_v61  ;;  %v345_v8 = vld [vmem:[#allocation5 + $0x258] sm:$0xff]  ;;  %v351_v9 = vld [vmem:[#allocation5 + $0x288] sm:$0xff]  ;;  %v1419_v12 = vpack.c.bf16 %v338_v4, %v332_v3 }
  0x7b   : > { %1414 = vmatprep.subr.bf16.mxu1 %v1413_v53  ;;  %v343_v10 = vld [vmem:[#allocation5 + $0x248] sm:$0xff]  ;;  %v349_v11 = vld [vmem:[#allocation5 + $0x278] sm:$0xff]  ;;  %v1387_v13 = vpack.c.bf16 %v336_v7, %v330_v5  ;;  %v1421_v14 = vpack.c.bf16 %v351_v9, %v345_v8  ;;  %v344_v15 = vld [vmem:[#allocation5 + $0x250] sm:$0xff] }
  0x7c   : > { %1380 = vmatpush1.bf16.msra.mxu0 %v1379_v52  ;;  %v350_v16 = vld [vmem:[#allocation5 + $0x280] sm:$0xff]  ;;  %v1389_v18 = vpack.c.bf16 %v349_v11, %v343_v10  ;;  %v348_v19 = vld [vmem:[#allocation5 + $0x270] sm:$0xff]  ;;  %v357_v20 = vld [vmem:[#allocation5 + $0x2b8] sm:$0xff] }
  0x7d   : > { %1382 = vmatprep.subr.bf16.mxu0 %v1381_v57  ;;  %v342_v17 = vld [vmem:[#allocation5 + $0x240] sm:$0xff]  ;;  %v363_v21 = vld [vmem:[#allocation5 + $0x2e8] sm:$0xff]  ;;  %v361_v23 = vld [vmem:[#allocation5 + $0x2d8] sm:$0xff]  ;;  %v1423_v24 = vpack.c.bf16 %v350_v16, %v344_v15 }
  0x7e   : > { %1416 = vmatpush1.bf16.msra.mxu1 %v1415_v63  ;;  %v355_v22 = vld [vmem:[#allocation5 + $0x2a8] sm:$0xff]  ;;  %v1391_v25 = vpack.c.bf16 %v348_v19, %v342_v17  ;;  %v1425_v26 = vpack.c.bf16 %v363_v21, %v357_v20  ;;  %v356_v27 = vld [vmem:[#allocation5 + $0x2b0] sm:$0xff]  ;;  %v362_v28 = vld [vmem:[#allocation5 + $0x2e0] sm:$0xff] }
  0x7f   : > { %1418 = vmatprep.subr.bf16.mxu1 %v1417_v2  ;;  %v1393_v29 = vpack.c.bf16 %v361_v23, %v355_v22  ;;  %v354_v30 = vld [vmem:[#allocation5 + $0x2a0] sm:$0xff]  ;;  %v360_v31 = vld [vmem:[#allocation5 + $0x2d0] sm:$0xff]  ;;  %v1427_v32 = vpack.c.bf16 %v362_v28, %v356_v27  ;;  %v275_v48 = vld [vmem:[#allocation5 + $0x28] sm:$0xff] }
  0x80   : > { %1384 = vmatpush1.bf16.msra.mxu0 %v1383_v1  ;;  %v1395_v33 = vpack.c.bf16 %v360_v31, %v354_v30  ;;  %v1978_v34 = vld [vmem:[%s1965_s23] sm:$0xff]  ;;  %v274_v50 = vld [vmem:[#allocation5 + $0x20] sm:$0xff]  ;;  %v287_v53 = vld [vmem:[#allocation5 + $0x88] sm:$0xff] }
  0x81   : > { %1386 = vmatprep.subr.bf16.mxu0 %v1385_v6  ;;  %v1993_v38 = vld [vmem:[%s2114_s2] sm:$0x3f]  ;;  %v281_v49 = vld [vmem:[#allocation5 + $0x58] sm:$0xff]  ;;  %v286_v57 = vld [vmem:[#allocation5 + $0x80] sm:$0xff] }
  0x82   : > { %1420 = vmatpush1.bf16.msra.mxu1 %v1419_v12  ;;  %v379_v40 = vrot.slane %v1993_v38, %v378_v37  ;;  %v371_v41 = vrot.slane %v1993_v38, %v370_v39  ;;  %v1429_v51 = vpack.c.bf16 %v281_v49, %v275_v48  ;;  %v280_v52 = vld [vmem:[#allocation5 + $0x50] sm:$0xff]  ;;  %v293_v54 = vld [vmem:[#allocation5 + $0xb8] sm:$0xff]  ;;  %v299_v59 = vld [vmem:[#allocation5 + $0xe8] sm:$0xff]  ;;  %v386_v48 = vsub.s32 4, %v1987_v36 }
  0x83   : > { %1422 = vmatprep.subr.bf16.mxu1 %v1421_v14  ;;  %v1431_v55 = vpack.c.bf16 %v280_v52, %v274_v50  ;;  %v1433_v56 = vpack.c.bf16 %v293_v54, %v287_v53  ;;  %v292_v58 = vld [vmem:[#allocation5 + $0xb0] sm:$0xff]  ;;  %v305_v60 = vld [vmem:[#allocation5 + $0x118] sm:$0xff]  ;;  %v298_v63 = vld [vmem:[#allocation5 + $0xe0] sm:$0xff] }
  0x84   : > { %1388 = vmatpush1.bf16.msra.mxu0 %v1387_v13  ;;  %v1435_v61 = vpack.c.bf16 %v292_v58, %v286_v57  ;;  %v1437_v62 = vpack.c.bf16 %v305_v60, %v299_v59  ;;  %v304_v1 = vld [vmem:[#allocation5 + $0x110] sm:$0xff]  ;;  %v311_v2 = vld [vmem:[#allocation5 + $0x148] sm:$0xff]  ;;  %v317_v3 = vld [vmem:[#allocation5 + $0x178] sm:$0xff]  ;;  %v387_v49 = vrot.slane %v1993_v38, %v386_v48 }
  0x85   : > { %1390 = vmatprep.subr.bf16.mxu0 %v1389_v18  ;;  %v1439_v4 = vpack.c.bf16 %v304_v1, %v298_v63  ;;  %v1441_v5 = vpack.c.bf16 %v317_v3, %v311_v2  ;;  %v310_v6 = vld [vmem:[#allocation5 + $0x140] sm:$0xff]  ;;  %v316_v7 = vld [vmem:[#allocation5 + $0x170] sm:$0xff]  ;;  %v323_v8 = vld [vmem:[#allocation5 + $0x1a8] sm:$0xff] }
  0x86   : > { %1424 = vmatpush1.bf16.msra.mxu1 %v1423_v24  ;;  %v329_v9 = vld [vmem:[#allocation5 + $0x1d8] sm:$0xff]  ;;  %v1443_v10 = vpack.c.bf16 %v316_v7, %v310_v6  ;;  %v322_v12 = vld [vmem:[#allocation5 + $0x1a0] sm:$0xff]  ;;  %v328_v13 = vld [vmem:[#allocation5 + $0x1d0] sm:$0xff] }
  0x87   : > { %1426 = vmatprep.subr.bf16.mxu1 %v1425_v26  ;;  %v1445_v11 = vpack.c.bf16 %v329_v9, %v323_v8  ;;  %v335_v14 = vld [vmem:[#allocation5 + $0x208] sm:$0xff]  ;;  %v341_v15 = vld [vmem:[#allocation5 + $0x238] sm:$0xff]  ;;  %v1447_v16 = vpack.c.bf16 %v328_v13, %v322_v12  ;;  %v334_v18 = vld [vmem:[#allocation5 + $0x200] sm:$0xff] }
  0x88   : > { %1392 = vmatpush1.bf16.msra.mxu0 %v1391_v25  ;;  %v1449_v17 = vpack.c.bf16 %v341_v15, %v335_v14  ;;  %v340_v19 = vld [vmem:[#allocation5 + $0x230] sm:$0xff]  ;;  %v347_v20 = vld [vmem:[#allocation5 + $0x268] sm:$0xff]  ;;  %v353_v21 = vld [vmem:[#allocation5 + $0x298] sm:$0xff] }
  0x89   : > { %1394 = vmatprep.subr.bf16.mxu0 %v1393_v29  ;;  %v1451_v22 = vpack.c.bf16 %v340_v19, %v334_v18  ;;  %v1453_v23 = vpack.c.bf16 %v353_v21, %v347_v20  ;;  %v346_v24 = vld [vmem:[#allocation5 + $0x260] sm:$0xff]  ;;  %v352_v25 = vld [vmem:[#allocation5 + $0x290] sm:$0xff]  ;;  %v359_v26 = vld [vmem:[#allocation5 + $0x2c8] sm:$0xff]  ;;  %v390_v19 = vsub.s32 5, %v1987_v36 }
  0x8a   : > { %1428 = vmatpush1.bf16.msra.mxu1 %v1427_v32  ;;  %v365_v27 = vld [vmem:[#allocation5 + $0x2f8] sm:$0xff]  ;;  %v1455_v28 = vpack.c.bf16 %v352_v25, %v346_v24  ;;  %v358_v30 = vld [vmem:[#allocation5 + $0x2c0] sm:$0xff]  ;;  %v364_v31 = vld [vmem:[#allocation5 + $0x2f0] sm:$0xff] }
  0x8b   : > { %1275 = vmatprep.subr.mxu1 %v1756_v0  ;;  %v1457_v29 = vpack.c.bf16 %v365_v27, %v359_v26  ;;  %v1459_v32 = vpack.c.bf16 %v364_v31, %v358_v30  ;;  %v773_v53 = vld [vmem:[#allocation7] sm:$0xff]  ;;  %v774_v54 = vld [vmem:[#allocation7 + $0x8] sm:$0xff]  ;;  %v776_v58 = vld [vmem:[#allocation7 + $0x18] sm:$0xff]  ;;  %v391_v24 = vrot.slane %v1993_v38, %v390_v19 }
  0x8c   : > { %1396 = vmatpush1.bf16.msra.mxu0 %v1395_v33  ;;  %v2009_v33 = vand.u32 127, %v368_v35  ;;  %v1486_v57 = vpack.c.bf16 %v774_v54, %v773_v53  ;;  %v777_v60 = vld [vmem:[#allocation7 + $0x20] sm:$0xff]  ;;  %v779_v63 = vld [vmem:[#allocation7 + $0x30] sm:$0xff]  ;;  %v780_v1 = vld [vmem:[#allocation7 + $0x38] sm:$0xff] }
  0x8d   : > { %534 = vmatmul.mubr.f32.vlgmr.msra.gmra.mrb[0].mxu1 %v1978_v34  ;;  %1430 = vmatprep.subr.bf16.mxu0 %v1429_v51  ;;  %v1495_v2 = vpack.c.bf16 %v780_v1, %v779_v63  ;;  %v781_v3 = vld [vmem:[#allocation7 + $0x40] sm:$0xff]  ;;  %v783_v6 = vld [vmem:[#allocation7 + $0x50] sm:$0xff]  ;;  %v784_v7 = vld [vmem:[#allocation7 + $0x58] sm:$0xff] }
  0x8e   : > { %1277 = vmatprep.mubr.msk.f32.mxu1 %vm1757_vm0, %v1756_v0  ;;  %vm615_vm1 = vcmp.le.s32.totalorder %v2009_v33, %v1987_v36  ;;  %v1501_v8 = vpack.c.bf16 %v784_v7, %v783_v6  ;;  %v785_v9 = vld [vmem:[#allocation7 + $0x60] sm:$0xff]  ;;  %v787_v12 = vld [vmem:[#allocation7 + $0x70] sm:$0xff]  ;;  %v788_v13 = vld [vmem:[#allocation7 + $0x78] sm:$0xff] }
  0x8f   : > { %463 = vmatmul.mubr.f32.vlgmr.msra.gmra.mrb[0].mxu0 %v1978_v34  ;;  %v1507_v14 = vpack.c.bf16 %v788_v13, %v787_v12  ;;  %v949_v48 = vld [vmem:[#allocation7 + $0x98] sm:$0xff]  ;;  %v952_v53 = vld [vmem:[#allocation7 + $0xb0] sm:$0xff]  ;;  %v959_v63 = vld [vmem:[#allocation7 + $0xe8] sm:$0xff] }
  0x90   : > { %604 = vmatprep.mubr.f32.mxu0 %v1756_v0  ;;  %1432 = vmatpush1.bf16.msra.mxu0 %v1431_v55  ;;  %v775_v55 = vld [vmem:[#allocation7 + $0x10] sm:$0xff]  ;;  %v953_v54 = vld [vmem:[#allocation7 + $0xb8] sm:$0xff] }
  0x91   : > { %1434 = vmatprep.subr.bf16.mxu0 %v1433_v56  ;;  %v1758_v56 = vmov 0.0|0.0   ;;  %v1489_v59 = vpack.c.bf16 %v776_v58, %v775_v55  ;;  %v1471_v55 = vpack.c.bf16 %v953_v54, %v952_v53  ;;  %v955_v58 = vld [vmem:[#allocation7 + $0xc8] sm:$0xff] }
  0x94   : > { %1436 = vmatpush1.bf16.msra.mxu0 %v1435_v61  ;;  %v778_v61 = vld [vmem:[#allocation7 + $0x28] sm:$0xff] }
  0x95   : > { %1438 = vmatprep.subr.bf16.mxu0 %v1437_v62  ;;  %v1492_v62 = vpack.c.bf16 %v778_v61, %v777_v60  ;;  %v957_v60 = vld [vmem:[#allocation7 + $0xd8] sm:$0xff] }
  0x98   : > { %1440 = vmatpush1.bf16.msra.mxu0 %v1439_v4  ;;  %v782_v4 = vld [vmem:[#allocation7 + $0x48] sm:$0xff] }
  0x99   : > { %1442 = vmatprep.subr.bf16.mxu0 %v1441_v5  ;;  %v1498_v5 = vpack.c.bf16 %v782_v4, %v781_v3  ;;  %v961_v3 = vld [vmem:[#allocation7 + $0xf8] sm:$0xff] }
  0x9c   : > { %1444 = vmatpush1.bf16.msra.mxu0 %v1443_v10  ;;  %v786_v10 = vld [vmem:[#allocation7 + $0x68] sm:$0xff] }
  0x9d   : > { %1446 = vmatprep.subr.bf16.mxu0 %v1445_v11  ;;  %v1504_v11 = vpack.c.bf16 %v786_v10, %v785_v9 }
  0xa0   : > { %1448 = vmatpush1.bf16.msra.mxu0 %v1447_v16  ;;  %v382_v16 = vsub.s32 3, %v1987_v36 }
  0xa1   : > { %1450 = vmatprep.subr.bf16.mxu0 %v1449_v17  ;;  %v374_v17 = vsub.s32 1, %v1987_v36 }
  0xa2   : > { %v383_v18 = vrot.slane %v1993_v38, %v382_v16 }
  0xa3   : > { %v375_v21 = vrot.slane %v1993_v38, %v374_v17 }
  0xa4   : > { %1452 = vmatpush1.bf16.msra.mxu0 %v1451_v22 }
  0xa5   : > { %1454 = vmatprep.subr.bf16.mxu0 %v1453_v23 }
  0xa8   : > { %1456 = vmatpush1.bf16.msra.mxu0 %v1455_v28 }
  0xa9   : > { %1458 = vmatprep.subr.bf16.mxu0 %v1457_v29 }
  0xac   : > { %1460 = vmatpush1.bf16.msra.mxu0 %v1459_v32 }
  0xad   : > { %1485 = vmatprep.subr.bf16.mxu0 %v1758_v56 }
  0xaf   : > { %605 = vmatmul.mubr.f32.vlgmr.msra.gmra.mrb[2].mxu0 %v1978_v34 }
  0xb0   : > { %1362 = vmatprep.mubr.msk.f32.mxu0 %vm1757_vm0, %v1756_v0  ;;  %1487 = vmatpush3.bf16.msra.mxu0 %v1486_v57  ;;  %v954_v57 = vld [vmem:[#allocation7 + $0xc0] sm:$0xff] }
  0xb1   : > { %1488 = vmatprep.subr.bf16.mxu0 %v1758_v56 }
  0xb4   : > { %1490 = vmatpush3.bf16.msra.mxu0 %v1489_v59  ;;  %v1474_v59 = vpack.c.bf16 %v955_v58, %v954_v57 }
  0xb5   : > { %1491 = vmatprep.subr.bf16.mxu0 %v1758_v56 }
  0xb8   : > { %1493 = vmatpush3.bf16.msra.mxu0 %v1492_v62  ;;  %v958_v62 = vld [vmem:[#allocation7 + $0xe0] sm:$0xff] }
  0xb9   : > { %1494 = vmatprep.subr.bf16.mxu0 %v1758_v56  ;;  %v1480_v1 = vpack.c.bf16 %v959_v63, %v958_v62 }
  0xbc   : > { %1496 = vmatpush3.bf16.msra.mxu0 %v1495_v2  ;;  %v960_v2 = vld [vmem:[#allocation7 + $0xf0] sm:$0xff] }
  0xbd   : > { %1497 = vmatprep.subr.bf16.mxu0 %v1758_v56  ;;  %v1483_v4 = vpack.c.bf16 %v961_v3, %v960_v2 }
  0xc0   : > { %1499 = vmatpush3.bf16.msra.mxu0 %v1498_v5 }
  0xc1   : > { %1500 = vmatprep.subr.bf16.mxu0 %v1758_v56 }
  0xc4   : > { %1502 = vmatpush3.bf16.msra.mxu0 %v1501_v8  ;;  %v1228_v8 = vld [vmem:[%s2116_s4] ss:$0 sm:$0xff] }
  0xc5   : > { %1503 = vmatprep.subr.bf16.mxu0 %v1758_v56 }
  0xc8   : > { %1505 = vmatpush3.bf16.msra.mxu0 %v1504_v11 }
  0xc9   : > { %1506 = vmatprep.subr.bf16.mxu0 %v1758_v56 }
  0xcc   : > { %1508 = vmatpush3.bf16.msra.mxu0 %v1507_v14 }
 0x160   : > { %v535_v42 = vpop.f32.mrb[0].mxu1 }
 0x161   : > { %v536_v43 = vadd.f32 %v535_v42, %v379_v40  ;;  %v1998_v44 = vpop.f32.mrb[1].mxu1 }
 0x162   : > { %v464_v45 = vpop.f32.mrb[0].mxu0  ;;  %v538_v23 = vadd.f32 %v1998_v44, %v383_v18 }
 0x163   : > { %v465_v46 = vadd.f32 %v464_v45, %v371_v41  ;;  %v2000_v47 = vpop.f32.mrb[1].mxu0  ;;  %1276 = vmatpush3.xpose.msra.mxu1 %v536_v43 }
 0x164   : > { %1280 = vmatprep.subr.mxu1 %v1756_v0  ;;  %v467_v25 = vadd.f32 %v2000_v47, %v375_v21 }
 0x166   : > { %1278 = vmatmul.mubr.f32.vlgmr.msra.gmra.mrb[2].mxu1 %v465_v46 }
 0x167   : > { %1282 = vmatprep.mubr.msk.f32.mxu1 %vm1757_vm0, %v1756_v0 }
 0x182   : > { %v606_v50 = vpop.f32.mrb[2].mxu0 }
 0x183   : > { %v607_v51 = vadd.f32 %v606_v50, %v387_v49  ;;  %v608_v52 = vpop.f32.mrb[3].mxu0  ;;  %v950_v50 = vld [vmem:[#allocation7 + $0xa0] sm:$0xff] }
 0x184   : > { %v609_v26 = vadd.f32 %v608_v52, %v391_v24 }
 0x185   : > { %1281 = vmatpush3.msra.mxu1 %v607_v51  ;;  %v951_v51 = vld [vmem:[#allocation7 + $0xa8] sm:$0xff] }
 0x186   : > { %1285 = vmatprep.subr.mxu1 %v1756_v0  ;;  %v1468_v52 = vpack.c.bf16 %v951_v51, %v950_v50 }
 0x239   : > { %v682_v37 = vpop.f32.mrb[2].mxu1 }
 0x23a   : > { %v686_v39 = vmul.f32 0.14142136, %v682_v37  ;;  %v1279_v40 = vpop.f32.mrb[3].mxu1 }
 0x23c   : > { %v687_v41 = vsel %vm615_vm1, %v686_v39, -1e+30 }
 0x23d   : > { %v689_v42 = vsel %vm688_vm2, %v687_v41, -inf }
 0x23e   : > { %690 = vmax.xlane.f32.xlu0 %v689_v42 }
 0x2cb   : > { %v691_v34 = vpop.xlane.xlu0 %690 }
 0x2cc   : > { %v692_v43 = vsub.f32 %v687_v41, %v691_v34 }
 0x2ce   : > { %v693_v45 = vmul.f32 1.442695, %v692_v43  ;;  %v946_v43 = vld [vmem:[#allocation7 + $0x80] sm:$0xff] }
 0x2d0   : > { %1583 = vpow2.f32 %v693_v45  ;;  %v947_v45 = vld [vmem:[#allocation7 + $0x88] sm:$0xff] }
 0x2d1   : > { %v1462_v36 = vpack.c.bf16 %v947_v45, %v946_v43 }
 0x2da   : > { %v1584_v35 = vpop.eup %1583 }
 0x2db   : > { %v695_v46 = vsel %vm688_vm2, %v1584_v35, 0.0 }
 0x2dc   : > { %696 = vadd.xlane.f32.xlu0 %v695_v46  ;;  %v948_v46 = vld [vmem:[#allocation7 + $0x90] sm:$0xff] }
 0x2dd   : > { %v1465_v49 = vpack.c.bf16 %v949_v48, %v948_v46 }
 0x369   : > { %v697_v15 = vpop.xlane.xlu0 %696 }
 0x36a   : > { %1585 = vrcp.f32 %v697_v15 }
 0x374   : > { %v1586_v20 = vpop.eup %1585 }
 0x375   : > { %v699_v22 = vmul.f32 %v1586_v20, %v1584_v35 }
 0x377   : > { %1283 = vmatmul.mubr.msk.f32.vlgmr.msra.gmra.mrb[4].mxu1 %vm688_vm2, %v699_v22 }
 0x378   : > { %1286 = vmatpush3.xpose.msra.mxu1 %v538_v23  ;;  %1287 = vmatprep.mubr.msk.f32.mxu1 %vm1757_vm0, %v1756_v0 }
 0x379   : > { %1290 = vmatprep.subr.mxu1 %v1756_v0 }
 0x37b   : > { %1288 = vmatmul.mubr.f32.vlgmr.msra.gmra.mrb[6].mxu1 %v467_v25 }
 0x37c   : > { %1291 = vmatpush3.msra.mxu1 %v609_v26  ;;  %1292 = vmatprep.mubr.msk.f32.mxu1 %vm1757_vm0, %v1756_v0 }
 0x37d   : > { %1461 = vmatprep.subr.bf16.mxu1 %v1758_v56 }
 0x44a   : > { %v769_v44 = vpop.f32.mrb[4].mxu1 }
 0x44b   : > { %v1284_v38 = vpop.f32.mrb[5].mxu1  ;;  %1363 = vmatmul.mubr.f32.vlgmr.msra.gmra.mrb[4].mxu0 %v769_v44 }
 0x44e   : > { %v855_v27 = vpop.f32.mrb[6].mxu1 }
 0x44f   : > { %v859_v28 = vmul.f32 0.14142136, %v855_v27  ;;  %v1289_v29 = vpop.f32.mrb[7].mxu1 }
 0x451   : > { %v860_v47 = vsel %vm615_vm1, %v859_v28, -1e+30 }
 0x452   : > { %v861_v30 = vsel %vm688_vm2, %v860_v47, -inf }
 0x453   : > { %862 = vmax.xlane.f32.xlu1 %v861_v30 }
 0x4e0   : > { %v863_v31 = vpop.xlane.xlu1 %862 }
 0x4e1   : > { %v864_v32 = vsub.f32 %v860_v47, %v863_v31 }
 0x4e3   : > { %v865_v37 = vmul.f32 1.442695, %v864_v32 }
 0x4e5   : > { %1587 = vpow2.f32 %v865_v37 }
 0x4ef   : > { %v1588_v39 = vpop.eup %1587 }
 0x4f0   : > { %v867_v40 = vsel %vm688_vm2, %v1588_v39, 0.0 }
 0x4f1   : > { %868 = vadd.xlane.f32.xlu1 %v867_v40 }
 0x51e   : > { %v1098_v41 = vpop.f32.mrb[4].mxu0 }
 0x51f   : > { %v1364_v42 = vpop.f32.mrb[5].mxu0 }
 0x57e   : > { %v869_v34 = vpop.xlane.xlu1 %868 }
 0x57f   : > { %1589 = vrcp.f32 %v869_v34 }
 0x589   : > { %v1590_v35 = vpop.eup %1589 }
 0x58a   : > { %v871_v33 = vmul.f32 %v1590_v35, %v1588_v39 }
 0x58c   : > { %1293 = vmatmul.mubr.msk.f32.vlgmr.msra.gmra.mrb[8].mxu1 %vm688_vm2, %v871_v33 }
 0x58d   : > { %1463 = vmatpush3.bf16.msra.mxu1 %v1462_v36  ;;  %1327 = vmatprep.mubr.msk.f32.mxu1 %vm1757_vm0, %v1756_v0  ;;  %v956_v0 = vld [vmem:[#allocation7 + $0xd0] sm:$0xff] }
 0x58e   : > { %1464 = vmatprep.subr.bf16.mxu1 %v1758_v56  ;;  %v1477_v61 = vpack.c.bf16 %v957_v60, %v956_v0 }
 0x591   : > { %1466 = vmatpush3.bf16.msra.mxu1 %v1465_v49 }
 0x592   : > { %1467 = vmatprep.subr.bf16.mxu1 %v1758_v56 }
 0x595   : > { %1469 = vmatpush3.bf16.msra.mxu1 %v1468_v52 }
 0x596   : > { %1470 = vmatprep.subr.bf16.mxu1 %v1758_v56 }
 0x599   : > { %1472 = vmatpush3.bf16.msra.mxu1 %v1471_v55 }
 0x59a   : > { %1473 = vmatprep.subr.bf16.mxu1 %v1758_v56 }
 0x59d   : > { %1475 = vmatpush3.bf16.msra.mxu1 %v1474_v59 }
 0x59e   : > { %1476 = vmatprep.subr.bf16.mxu1 %v1758_v56 }
 0x5a1   : > { %1478 = vmatpush3.bf16.msra.mxu1 %v1477_v61 }
 0x5a2   : > { %1479 = vmatprep.subr.bf16.mxu1 %v1758_v56 }
 0x5a5   : > { %1481 = vmatpush3.bf16.msra.mxu1 %v1480_v1 }
 0x5a6   : > { %1482 = vmatprep.subr.bf16.mxu1 %v1758_v56 }
 0x5a9   : > { %1484 = vmatpush3.bf16.msra.mxu1 %v1483_v4 }
 0x65f   : > { %v941_v5 = vpop.f32.mrb[8].mxu1 }
 0x660   : > { %v1294_v6 = vpop.f32.mrb[9].mxu1  ;;  %1328 = vmatmul.mubr.f32.vlgmr.msra.gmra.mrb[10].mxu1 %v941_v5 }
 0x733   : > { %v1028_v7 = vpop.f32.mrb[10].mxu1 }
 0x734   : > { %v1099_v9 = vadd.f32 %v1098_v41, %v1028_v7  ;;  %v1329_v10 = vpop.f32.mrb[11].mxu1 }
 0x736   : > { %v1109_v11 = vadd.f32 %v1228_v8, %v1099_v9 }
 0x738   : > { %1110 = vst [vmem:[%s268_s13] sm:$0xff] %v1109_v11 }
 0x739   : > { %1690 = shalt.err (!%p1687_p2)
}
 0x73a   : > { %s1691_s14 = scalar_lea.hbm %s2068_s8, 128  ;;  %s1695_s26 = scalar_lea.hbm %s2117_s5, 256 }
 0x73b   : > { %p1692_p13 = scmp.ne.s32.totalorder %s2068_s8, %s1691_s14  ;;  %p1696_p4 = scmp.lt.u32.totalorder %s2068_s8, %s2117_s5 }
 0x73c   : > { %p1697_p7 = scmp.lt.u32.totalorder %s1695_s26, %s1691_s14  ;;  %p1699_p11 = scmp.lt.u32.totalorder %s1691_s14, %s2068_s8 }
 0x73d   : > { %p1693_p6 = pnand %p1692_p13, %p2131_p0 }
 0x73e   : > { %p1698_p8 = por %p1697_p7, %p1696_p4 }
 0x73f   : > { %p1694_p10 = pneg %p1693_p6 }
 0x740   : > { %p1700_p1 = por %p1699_p11, %p1698_p8 }
 0x742   : > { %p1701_p3 = pnand %p1700_p1, %p1694_p10 }
 0x744   : > { %1704 = shalt.err (!%p1701_p3)
}
 0x745   : > { %1519 = dma.vmem_to_hbm [thread:$0]  (%p2131_p0), %s2070_s7, 128, %s2068_s8, %s1112_s9  }
 0x746 PF: > { %s1137_s12 = sand.u32 1, %s1735_s18   ;;  %p2132_p5 = scmp.ne.s32.totalorder %s2122_s25, 0 }
 0x747   : > { %p2133_p9 = scmp.ge.s32.totalorder %s1747_s21, 2  ;;  %s1138_s13 = scalar_lea.sflag [#allocation4], %s1137_s12 }
 0x749   : > { %p1533_p12 = pnand %p2133_p9, %p2132_p5 }
 0x74b   : > { %1730 = dma.done.wait (!%p1533_p12), %s1138_s13, 128  }
 0x74c   : > { %1732 = vsyncadd (!%p1533_p12), %s1138_s13, 4294967168  ;;  %p19_p2 = scmp.ge.s32.totalorder %s1900_s16, 4   ;;  %s2134_s18 = smov %s1739_s19 }
 0x74d   : > { %s2135_s19 = smov %s1743_s20  ;;  %s2136_s20 = smov %s1909_s27 }
 0x74e   : > { %s2137_s21 = smov %s1900_s16  ;;  %21 = sbr.rel (!%p19_p2) target bundleno = 6 (0x6), region = 94 }
 0x755   :  { %1143 = vsyncpa [#allocation3], 1 }
 0x756   :  { %1145 = vsyncpa [#allocation3 + $0x1], 1 }
 0x757   :  { %1146 = vsyncpa [#allocation6], 1 }
 0x758   :  { %1147 = vsyncpa [#allocation4], 1 }
 0x759   :  { %1149 = vsyncpa [#allocation4 + $0x1], 1 }

</bundles_post_ra>
